<compile_context>
chip_gen: v5e
topology: v5e:2x2
jax: 0.10.0
libtpu: 0.0.40
codegen_flags: <defaults>
</compile_context>

<pallas_src>
import functools

import jax
import jax.numpy as jnp
from jax import lax
from jax.experimental import pallas as pl
from jax.experimental.pallas import tpu as pltpu


def _round_up(x, m):
    return (x + m - 1) // m * m


def _fc_kernel(dropout, p, negative_slope, *refs):
    """grid = (M/tm, N/tn, K/tk); K is the innermost (reduction) axis."""
    if dropout:
        seed_ref, x_ref, w_ref, b_ref, o_ref = refs
    else:
        x_ref, w_ref, b_ref, o_ref = refs
        seed_ref = None

    # NOTE: program ids / num_programs / the scalar seed are read at the top
    # level of the kernel and closed over by the pl.when bodies below.
    # Calling pl.program_id inside a pl.when body breaks the interpret/CPU
    # lowering path (primitive survives into the cond branch jaxpr).
    i = pl.program_id(0)
    j = pl.program_id(1)
    k = pl.program_id(2)
    nk = pl.num_programs(2)
    seed_u = seed_ref[0].astype(jnp.uint32) if dropout else None

    @pl.when(k == 0)
    def _init():
        # Bias folded into the accumulator init.  The output block (i, j) is
        # resident in VMEM for the whole K loop (its block index is constant
        # over k), so we accumulate directly into the f32 output: no extra
        # VMEM scratch and no final copy/cast.
        o_ref[...] = jnp.broadcast_to(b_ref[...].astype(jnp.float32),
                                      o_ref.shape)

    # Linear: x_tile @ W^T_tile on the MXU (bf16 operands by default),
    # accumulated in f32.
    o_ref[...] += jnp.dot(x_ref[...], w_ref[...],
                          preferred_element_type=jnp.float32)

    # Epilogue (dropout + LeakyReLU) only on the last K step.
    @pl.when(k == nk - 1)
    def _epilogue():
        y = o_ref[...]
        tm, tn = y.shape

        if dropout and p >= 1.0:                 # degenerate: drop everything
            y = jnp.zeros_like(y)
        elif dropout and p > 0.0:
            # Stateless hash of (seed, global_row, global_col): cheap
            # (tm,1) row / (1,tn) col terms combined with one broadcasted
            # xor, then a 2-D avalanche mix -> ~uniform uint32 bits.
            rows = (lax.broadcasted_iota(jnp.int32, (tm, 1), 0)
                    + i * tm).astype(jnp.uint32)
            cols = (lax.broadcasted_iota(jnp.int32, (1, tn), 1)
                    + j * tn).astype(jnp.uint32)
            h = (rows * jnp.uint32(0x9E3779B1)) ^ (cols * jnp.uint32(0x85EBCA77))
            h = h + (seed_u * jnp.uint32(0xC2B2AE3D) + jnp.uint32(0x27D4EB2F))
            h = (h ^ (h >> 16)) * jnp.uint32(0x7FEB352D)
            h = (h ^ (h >> 15)) * jnp.uint32(0x846CA68B)
            h = h ^ (h >> 16)
            threshold = min(int(round(p * 4294967296.0)), 4294967295)
            keep = h >= jnp.uint32(threshold)     # P(keep) = 1 - p
            y = jnp.where(keep, y * jnp.float32(1.0 / (1.0 - p)),
                          jnp.float32(0.0))

        # LeakyReLU (default negative_slope = 0.01), in f32.
        y = jnp.where(y >= 0, y, jnp.float32(negative_slope) * y)
        o_ref[...] = y


def _fc_forward_padded(x_p, w_pad, b_pad, seed, *, dropout, p, negative_slope,
                       tm, tn, tk):
    """x_p: (M_pad, K_pad); w_pad: (K_pad, N_pad); b_pad: (1, N_pad) f32."""
    M_pad, K_pad = x_p.shape
    Kw, N_pad = w_pad.shape
    assert Kw == K_pad
    assert M_pad % tm == 0 and N_pad % tn == 0 and K_pad % tk == 0

    grid = (M_pad // tm, N_pad // tn, K_pad // tk)

    in_specs = [
        pl.BlockSpec((tm, tk), lambda i, j, k, *_: (i, k)),   # x tile
        pl.BlockSpec((tk, tn), lambda i, j, k, *_: (k, j)),   # W^T tile
        pl.BlockSpec((1, tn),  lambda i, j, k, *_: (0, j)),   # bias tile
    ]
    out_spec = pl.BlockSpec((tm, tn), lambda i, j, k, *_: (i, j))

    kernel = functools.partial(_fc_kernel, bool(dropout), float(p),
                               float(negative_slope))

    operands = (x_p, w_pad, b_pad)
    if dropout:
        operands = (jnp.asarray([seed], dtype=jnp.int32),) + operands

    bytes_accessed = int(
        x_p.size * x_p.dtype.itemsize * grid[1]          # x re-read per N block
        + w_pad.size * w_pad.dtype.itemsize * grid[0]    # W re-read per M block
        + b_pad.size * b_pad.dtype.itemsize
        + M_pad * N_pad * 4)                             # f32 output
    cost = pl.CostEstimate(flops=2 * M_pad * N_pad * K_pad,
                           transcendentals=0,
                           bytes_accessed=bytes_accessed)

    return pl.pallas_call(
        kernel,
        out_shape=jax.ShapeDtypeStruct((M_pad, N_pad), jnp.float32),
        grid_spec=pltpu.PrefetchScalarGridSpec(
            num_scalar_prefetch=1 if dropout else 0,
            grid=grid,
            in_specs=in_specs,
            out_specs=out_spec,
        ),
        compiler_params=pltpu.CompilerParams(
            dimension_semantics=("parallel", "parallel", "arbitrary"),
            vmem_limit_bytes=48 * 1024 * 1024,   # stays under v7x's 64 MiB VMEM
        ),
        cost_estimate=cost,
    )(*operands)


class FC:
    """Pallas-TPU port of the PyTorch FC module:
       Linear(dim_in, dim_out) -> Dropout(p=0.5) -> LeakyReLU(0.01).

    The weight is stored pre-transposed as (dim_in, dim_out), padded to the
    (tk, tn) tile grid and cast to the MXU compute dtype ONCE at construction,
    so the per-call path only (maybe) pads x.
    """

    def __init__(self, dim_in, dim_out, dropout=True, *, key,
                 compute_dtype=jnp.bfloat16, p=0.5, negative_slope=0.01):
        self.dim_in = int(dim_in)
        self.dim_out = int(dim_out)
        self.dropout = bool(dropout)
        self.p = float(p)
        self.negative_slope = float(negative_slope)
        self.compute_dtype = jnp.dtype(compute_dtype)

        kw, kb = jax.random.split(key)
        bound = 1.0 / (dim_in ** 0.5)
        # nn.Linear-style init; weight stored pre-transposed (dim_in, dim_out).
        self.weight_t = jax.random.uniform(kw, (dim_in, dim_out), jnp.float32,
                                           minval=-bound, maxval=bound)
        self.bias = jax.random.uniform(kb, (dim_out,), jnp.float32,
                                       minval=-bound, maxval=bound)

        # ---- choose N/K tiling once; pad + cast parameters once ----
        K128 = _round_up(self.dim_in, 128)
        N128 = _round_up(self.dim_out, 128)
        self.tk = K128 if K128 <= 1024 else next(
            c for c in (1024, 512, 256, 128) if K128 % c == 0)
        self.tn = N128 if N128 <= 512 else next(
            c for c in (512, 256, 128) if N128 % c == 0)
        self.K_pad, self.N_pad = K128, N128

        w = self.weight_t
        if (self.K_pad, self.N_pad) != (self.dim_in, self.dim_out):
            w = jnp.pad(w, ((0, self.K_pad - self.dim_in),
                            (0, self.N_pad - self.dim_out)))
        self.w_pad = w.astype(self.compute_dtype)

        b = self.bias
        if self.N_pad != self.dim_out:
            b = jnp.pad(b, (0, self.N_pad - self.dim_out))
        self.b_pad = b.reshape(1, self.N_pad).astype(jnp.float32)

    def __call__(self, x, seed=0):
        M, K = x.shape
        assert K == self.dim_in, (K, self.dim_in)

        # bf16 packs 2 rows/sublane -> round the sublane tile to 16, not 8.
        sub = 16 if self.compute_dtype == jnp.bfloat16 else 8
        tm = min(256, _round_up(M, sub))
        M_pad = _round_up(M, tm)

        tn = self.tn
        # v7x has 2 TensorCores: if the batch axis gives a single block, try
        # to expose >= 2 blocks along N so both cores get work.
        if M_pad // tm == 1 and self.N_pad // tn == 1 and self.N_pad % 256 == 0:
            tn = self.N_pad // 2

        x_p = x
        if (M_pad, self.K_pad) != (M, K):
            x_p = jnp.pad(x, ((0, M_pad - M), (0, self.K_pad - K)))
        x_p = x_p.astype(self.compute_dtype)

        out = _fc_forward_padded(
            x_p, self.w_pad, self.b_pad, seed,
            dropout=self.dropout, p=self.p,
            negative_slope=self.negative_slope,
            tm=tm, tn=tn, tk=self.tk)

        if (M_pad, self.N_pad) != (M, self.dim_out):
            out = out[:M, :self.dim_out]
        return out


if __name__ == "__main__":
    # Small shapes consistent with the module: batch=8, dim_in=32, dim_out=64.
    B, DIM_IN, DIM_OUT = 8, 32, 64

    key = jax.random.PRNGKey(0)
    kx, kp = jax.random.split(key)
    x = jax.random.normal(kx, (B, DIM_IN), jnp.float32)

    # Same `kp` -> identical weights across all three instances.
    fc_eval_f32 = FC(DIM_IN, DIM_OUT, dropout=False, key=kp,
                     compute_dtype=jnp.float32)
    fc_eval = FC(DIM_IN, DIM_OUT, dropout=False, key=kp)       # bf16 default
    fc_train = FC(DIM_IN, DIM_OUT, dropout=True, key=kp)       # bf16, p=0.5

    # f32 reference: linear + leaky_relu.
    lin = x @ fc_eval_f32.weight_t + fc_eval_f32.bias
    ref = jnp.where(lin >= 0, lin, 0.01 * lin)

    # 1) Inference path, f32 operands: tight check vs reference.
    out_f32 = fc_eval_f32(x)
    jax.block_until_ready(out_f32)
    assert out_f32.shape == (B, DIM_OUT)
    assert jnp.allclose(out_f32, ref, atol=1e-4, rtol=1e-4)

    # 2) Default bf16-operand path (f32 accumulation): compare against the
    #    bf16-cast reference (same products, f32 accumulation).
    x_bf = x.astype(jnp.bfloat16).astype(jnp.float32)
    w_bf = fc_eval.weight_t.astype(jnp.bfloat16).astype(jnp.float32)
    lin_bf = x_bf @ w_bf + fc_eval.bias
    ref_bf = jnp.where(lin_bf >= 0, lin_bf, 0.01 * lin_bf)
    out_bf = fc_eval(x)
    jax.block_until_ready(out_bf)
    assert out_bf.shape == (B, DIM_OUT)
    assert jnp.allclose(out_bf, ref_bf, atol=1e-3, rtol=1e-3)

    # 3) Training path (dropout p=0.5): kept elements equal leaky_relu(2*lin),
    #    dropped elements are exactly 0, drop fraction near p.
    out_d = fc_train(x, seed=1234)
    jax.block_until_ready(out_d)
    assert out_d.shape == (B, DIM_OUT)
    kept_ref = jnp.where(2.0 * lin_bf >= 0, 2.0 * lin_bf, 0.01 * 2.0 * lin_bf)
    mask = out_d != 0
    assert jnp.allclose(jnp.where(mask, out_d, 0.0),
                        jnp.where(mask, kept_ref, 0.0),
                        atol=1e-3, rtol=1e-3)
    drop_frac = 1.0 - float(jnp.mean(mask.astype(jnp.float32)))
    assert 0.2 < drop_frac < 0.8, drop_frac

    print("KERNEL_OK")
</pallas_src>

<mosaic_0001>
module attributes {stable_mosaic.version = 11 : i64} {
  func.func @_fc_kernel(%arg0: i32, %arg1: i32, %arg2: i32, %arg3: memref<8x128xf32, #tpu.memory_space<vmem>>, %arg4: memref<128x128xf32, #tpu.memory_space<vmem>>, %arg5: memref<1x128xf32, #tpu.memory_space<vmem>>, %arg6: memref<8x128xf32, #tpu.memory_space<vmem>>) attributes {dimension_semantics = [#tpu.dimension_semantics<parallel>, #tpu.dimension_semantics<parallel>, #tpu.dimension_semantics<arbitrary>], iteration_bounds = array<i64: 1, 1, 1>, scalar_prefetch = 0 : i64, scratch_operands = 0 : i64, tpu.core_type = #tpu.core_type<tc>, window_params = [{transform_indices = @transform_0, window_bounds = array<i64: 8, 128>}, {transform_indices = @transform_1, window_bounds = array<i64: 128, 128>}, {transform_indices = @transform_2, window_bounds = array<i64: 1, 128>}, {transform_indices = @transform_3, window_bounds = array<i64: 8, 128>}]} {
    %c0_i32 = arith.constant 0 : i32
    %0 = arith.cmpi eq, %arg2, %c0_i32 : i32
    %1 = arith.extui %0 : i1 to i32
    %c0_i32_0 = arith.constant 0 : i32
    %2 = arith.cmpi ne, %1, %c0_i32_0 : i32
    scf.if %2 {
      %c0_10 = arith.constant 0 : index
      %c0_11 = arith.constant 0 : index
      %12 = vector.load %arg5[%c0_10, %c0_11] : memref<1x128xf32, #tpu.memory_space<vmem>>, vector<1x128xf32>
      %13 = vector.shape_cast %12 : vector<1x128xf32> to vector<1x128xf32>
      %14 = vector.broadcast %13 : vector<1x128xf32> to vector<8x128xf32>
      %c0_12 = arith.constant 0 : index
      %c0_13 = arith.constant 0 : index
      %15 = vector.load %arg6[%c0_12, %c0_13] : memref<8x128xf32, #tpu.memory_space<vmem>>, vector<8x128xf32>
      tpu.vector_store %arg6[%c0_12, %c0_13], %14 {strides = array<i32>} : memref<8x128xf32, #tpu.memory_space<vmem>>, vector<8x128xf32>,
    } else {
    }
    %c0 = arith.constant 0 : index
    %c0_1 = arith.constant 0 : index
    %3 = vector.load %arg6[%c0, %c0_1] : memref<8x128xf32, #tpu.memory_space<vmem>>, vector<8x128xf32>
    %c0_2 = arith.constant 0 : index
    %c0_3 = arith.constant 0 : index
    %4 = vector.load %arg3[%c0_2, %c0_3] : memref<8x128xf32, #tpu.memory_space<vmem>>, vector<8x128xf32>
    %c0_4 = arith.constant 0 : index
    %c0_5 = arith.constant 0 : index
    %5 = vector.load %arg4[%c0_4, %c0_5] : memref<128x128xf32, #tpu.memory_space<vmem>>, vector<128x128xf32>
    %cst = arith.constant dense<0.000000e+00> : vector<8x128xf32>
    %6 = tpu.matmul %4, %5, %cst {dimension_numbers = #tpu.dot_dimension_numbers<[1], [0], [0], [1], [0, 0, 1, 1], [], []>} : vector<8x128xf32>, vector<128x128xf32>, vector<8x128xf32> -> vector<8x128xf32>
    %7 = arith.addf %3, %6 : vector<8x128xf32>
    %c0_6 = arith.constant 0 : index
    %c0_7 = arith.constant 0 : index
    %8 = vector.load %arg6[%c0_6, %c0_7] : memref<8x128xf32, #tpu.memory_space<vmem>>, vector<8x128xf32>
    tpu.vector_store %arg6[%c0_6, %c0_7], %7 {strides = array<i32>} : memref<8x128xf32, #tpu.memory_space<vmem>>, vector<8x128xf32>,
    %c0_i32_8 = arith.constant 0 : i32
    %9 = arith.cmpi eq, %arg2, %c0_i32_8 : i32
    %10 = arith.extui %9 : i1 to i32
    %c0_i32_9 = arith.constant 0 : i32
    %11 = arith.cmpi ne, %10, %c0_i32_9 : i32
    scf.if %11 {
      %c0_10 = arith.constant 0 : index
      %c0_11 = arith.constant 0 : index
      %12 = vector.load %arg6[%c0_10, %c0_11] : memref<8x128xf32, #tpu.memory_space<vmem>>, vector<8x128xf32>
      %cst_12 = arith.constant 0.000000e+00 : f32
      %13 = vector.broadcast %cst_12 : f32 to vector<8x128xf32>
      %14 = arith.cmpf oge, %12, %13 : vector<8x128xf32>
      %cst_13 = arith.constant 0.00999999977 : f32
      %15 = vector.broadcast %cst_13 : f32 to vector<8x128xf32>
      %16 = arith.mulf %15, %12 : vector<8x128xf32>
      %17 = arith.select %14, %12, %16 : vector<8x128xi1>, vector<8x128xf32>
      %c0_14 = arith.constant 0 : index
      %c0_15 = arith.constant 0 : index
      %18 = vector.load %arg6[%c0_14, %c0_15] : memref<8x128xf32, #tpu.memory_space<vmem>>, vector<8x128xf32>
      tpu.vector_store %arg6[%c0_14, %c0_15], %17 {strides = array<i32>} : memref<8x128xf32, #tpu.memory_space<vmem>>, vector<8x128xf32>,
    } else {
    }
    return
  }
  func.func @transform_0(%arg0: i32, %arg1: i32, %arg2: i32) -> (i32, i32) {
    %c0_i32 = arith.constant 0 : i32
    return %arg0, %arg2 : i32, i32
  }
  func.func @transform_1(%arg0: i32, %arg1: i32, %arg2: i32) -> (i32, i32) {
    %c0_i32 = arith.constant 0 : i32
    return %arg2, %arg1 : i32, i32
  }
  func.func @transform_2(%arg0: i32, %arg1: i32, %arg2: i32) -> (i32, i32) {
    %c0_i32 = arith.constant 0 : i32
    %c0_i32_0 = arith.constant 0 : i32
    return %c0_i32, %arg1 : i32, i32
  }
  func.func @transform_3(%arg0: i32, %arg1: i32, %arg2: i32) -> (i32, i32) {
    %c0_i32 = arith.constant 0 : i32
    return %arg0, %arg1 : i32, i32
  }
}

</mosaic_0001>

<bundles_post_ra>
// kernel: tpu_custom_call.1
= control target key start
LH: loop header
LB: loop body
LE: loop exit
PB: predicated region body
PF: predicated region fallthrough
CT: control target
= control target key end

     0   :  { %8 = vsyncpa [#allocation3], 0  ;;  %s241_s0 = inlined_call_operand.hbm [shape: f32[8,128], index: 0, kind: input, shape index: {}]   ;;  %s242_s1 = inlined_call_operand.hbm [shape: f32[128,128], index: 1, kind: input, shape index: {}]   ;;  %s243_s2 = inlined_call_operand.vmem [shape: f32[1,128], index: 2, kind: input, shape index: {}]   ;;  %s244_s3 = inlined_call_operand.hbm [shape: f32[8,128], index: 3, kind: output, shape index: {}]  }
   0x1   :  { %9 = vsyncpa [#allocation6], 0 }
   0x2   :  { %10 = vsyncpa [#allocation4], 0  ;;  %s16_s14 = sshll.u32 %s241_s0, 4  ;;  %s204_s15 = smov [#allocation2]   ;;  %s17_s14 = int_to_ptr.hbm [resolvable:$true] %s16_s14 }
   0x3   :  { %s18_s16 = sshll.u32 %s204_s15, 4  ;;  %s26_s19 = sshll.u32 %s242_s1, 4  ;;  %s19_s16 = int_to_ptr.vmem [resolvable:$true] %s18_s16  ;;  %s27_s19 = int_to_ptr.hbm [resolvable:$true] %s26_s19 }
   0x4   :  { %21 = dma.hbm_to_vmem [thread:$0]  %s17_s14, 128, %s19_s16, [#allocation3]  }
   0x5   :  { %s205_s20 = smov [#allocation5]   ;;  %s206_s22 = smov 128  }
   0x6   :  { %s28_s21 = sshll.u32 %s205_s20, 4  ;;  %s207_s23 = smov 8   ;;  %s29_s21 = int_to_ptr.vmem [resolvable:$true] %s28_s21 }
   0x7   :  { %34 = dma.hbm_to_vmem [thread:$0]  %s27_s19, 2048, %s29_s21, [#allocation6], %s206_s22, %s206_s22, %s207_s23  }
   0x8   :  { %198 = dma.done.wait [#allocation3], 128  }
   0x9   :  { %199 = vsyncadd [#allocation3], 4294967168 }
   0xa   :  { %200 = dma.done.wait [#allocation6], 2048  }
   0xb   :  { %201 = vsyncadd [#allocation6], 4294965248  ;;  %v71_v0 = vld [vmem:[#allocation5 + $0x78] sm:$0xff]  ;;  %v70_v1 = vld [vmem:[#allocation5 + $0x70] sm:$0xff]  ;;  %s208_s24 = smov [#allocation7]   ;;  %s109_s28 = sshll.u32 %s244_s3, 4  ;;  %s110_s28 = int_to_ptr.hbm [resolvable:$true] %s109_s28 }
   0xc   :  { %72 = vmatpush.msra.mxu0 %v71_v0  ;;  %v69_v2 = vld [vmem:[#allocation5 + $0x68] sm:$0xff]  ;;  %v68_v3 = vld [vmem:[#allocation5 + $0x60] sm:$0xff]  ;;  %v67_v4 = vld [vmem:[#allocation5 + $0x58] sm:$0xff]  ;;  %s107_s25 = sshll.u32 %s208_s24, 4  ;;  %s108_s25 = int_to_ptr.vmem [resolvable:$true] %s107_s25 }
   0xd   :  { %v66_v5 = vld [vmem:[#allocation5 + $0x50] sm:$0xff]  ;;  %v65_v6 = vld [vmem:[#allocation5 + $0x48] sm:$0xff]  ;;  %v64_v7 = vld [vmem:[#allocation5 + $0x40] sm:$0xff] }
   0xe   :  { %73 = vmatpush.msra.mxu0 %v70_v1  ;;  %v63_v8 = vld [vmem:[#allocation5 + $0x38] sm:$0xff]  ;;  %v62_v9 = vld [vmem:[#allocation5 + $0x30] sm:$0xff]  ;;  %v61_v10 = vld [vmem:[#allocation5 + $0x28] sm:$0xff] }
   0xf   :  { %v60_v11 = vld [vmem:[#allocation5 + $0x20] sm:$0xff]  ;;  %v59_v12 = vld [vmem:[#allocation5 + $0x18] sm:$0xff]  ;;  %v58_v13 = vld [vmem:[#allocation5 + $0x10] sm:$0xff] }
  0x10   :  { %74 = vmatpush.msra.mxu0 %v69_v2  ;;  %v57_v14 = vld [vmem:[#allocation5 + $0x8] sm:$0xff]  ;;  %v56_v15 = vld [vmem:[#allocation5] sm:$0xff]  ;;  %v55_v16 = vld [vmem:[#allocation2] sm:$0xff] }
  0x11   :  { %v125_v17 = vld [vmem:[%s243_s2] ss:$0 sm:$0xff] }
  0x12   :  { %75 = vmatpush.msra.mxu0 %v68_v3 }
  0x14   :  { %76 = vmatpush.msra.mxu0 %v67_v4 }
  0x16   :  { %77 = vmatpush.msra.mxu0 %v66_v5 }
  0x18   :  { %78 = vmatpush.msra.mxu0 %v65_v6 }
  0x1a   :  { %79 = vmatpush.msra.mxu0 %v64_v7 }
  0x1c   :  { %80 = vmatpush.msra.mxu0 %v63_v8 }
  0x1e   :  { %81 = vmatpush.msra.mxu0 %v62_v9 }
  0x20   :  { %82 = vmatpush.msra.mxu0 %v61_v10 }
  0x22   :  { %83 = vmatpush.msra.mxu0 %v60_v11 }
  0x24   :  { %84 = vmatpush.msra.mxu0 %v59_v12 }
  0x26   :  { %85 = vmatpush.msra.mxu0 %v58_v13 }
  0x28   :  { %86 = vmatpush.msra.mxu0 %v57_v14 }
  0x2a   :  { %87 = vmatpush.msra.mxu0 %v56_v15 }
  0x2b   :  { %88 = vmatmul.f32.vlgmr.msra.gmra.mxu0 %v55_v16 }
  0xa8   :  { %v89_v18 = vpop.f32.mrf.mxu0 }
  0xa9   :  { %v92_v19 = vadd.f32 %v125_v17, %v89_v18 }
  0xab   :  { %vm98_vm0 = vcmp.ge.f32.partialorder %v92_v19, 0.0  ;;  %v99_v20 = vmul.f32 0.01, %v92_v19 }
  0xad   :  { %v100_v21 = vsel %vm98_vm0, %v92_v19, %v99_v20 }
  0xae   :  { %101 = vst [vmem:[#allocation7] sm:$0xff] %v100_v21 }
  0xaf   :  { %112 = dma.vmem_to_hbm [thread:$0]  %s108_s25, 128, %s110_s28, [#allocation4]  }
  0xb0   :  { %202 = dma.done.wait [#allocation4], 128  }
  0xb1   :  { %203 = vsyncadd [#allocation4], 4294967168 }
  0xb2   :  { %117 = vsyncpa [#allocation3], 1 }
  0xb3   :  { %118 = vsyncpa [#allocation6], 1 }
  0xb4   :  { %119 = vsyncpa [#allocation4], 1 }

</bundles_post_ra>
